<compile_context>
chip_gen: v7x
topology: tpu7x:2x2x1
jax: 0.10.0
libtpu: 0.0.40
codegen_flags: <defaults>
</compile_context>

<pallas_src>
import jax
import jax.numpy as jnp
from jax.experimental import pallas as pl
from jax.experimental.pallas import tpu as pltpu


# ------------------------------ Pallas kernel ------------------------------ #

def _tconv_bn_relu_kernel(x_ref, w_ref, scale_ref, shift_ref, o_ref, xcat_ref):
    # x_ref     : (B, L, C)     channels-last activations (whole batch, one step)
    # w_ref     : (2C, Np)      phase-flattened ConvTranspose1d weights, lane-padded
    #                           w_cat[c,     r*C + o] = W[c, o, r]      (taps ki in [0, s))
    #                           w_cat[C + c, r*C + o] = W[c, o, r + s]  (taps ki in [s, 2s))
    # scale_ref : (1, Np)       folded BatchNorm scale, tiled per phase (0 in pad lanes)
    # shift_ref : (1, Np)       folded BatchNorm shift, tiled per phase (0 in pad lanes)
    # o_ref     : (B*Mp, Np)    extended phase-flattened output, rows padded to 8/batch
    # xcat_ref  : (B*Mp, 2C)    VMEM scratch: [x_lo | x_hi], batches stacked along rows
    B, L, C = x_ref.shape
    Mp = o_ref.shape[0] // B

    # Pre-zero once: the conv-transpose boundary rows (t0 == L for the "lo" taps,
    # t0 == 0 for the "hi" taps) and the <8-row padding are simply the rows we
    # never overwrite.  No concatenate, no pad, no lane shuffles.
    xcat_ref[...] = jnp.zeros_like(xcat_ref)
    for b in range(B):                                # static unroll, B is tiny
        xb = x_ref[b]                                 # (L, C)
        r0 = b * Mp
        xcat_ref[r0:r0 + L, 0:C] = xb                 # lo taps: row t0 <- x[t0]
        xcat_ref[r0 + 1:r0 + 1 + L, C:2 * C] = xb     # hi taps: row t0 <- x[t0-1]

    # Single K = 2C contraction over the whole batch (M = B*Mp, N = Np lane-dense).
    y = jnp.dot(xcat_ref[...], w_ref[...], preferred_element_type=jnp.float32)
    y = y * scale_ref[...] + shift_ref[...]           # fused BN (inference) affine
    o_ref[...] = jnp.maximum(y, 0.0)                  # fused ReLU


# ------------------------ one-time parameter folding ------------------------ #

def fold_tconv_params(w, bn_scale, bn_shift, stride):
    """Fold ConvTranspose1d weights + BN affine ONCE (parameter-load time).

    w        : (C_in, C_out, k) ConvTranspose1d weight, C_in == C_out == C, k == 2*stride
    bn_scale : (C,) = gamma / sqrt(running_var + eps)
    bn_shift : (C,) = beta - running_mean * bn_scale
    returns  : w_cat (2C, Np), scale_row (1, Np), shift_row (1, Np)
               with Np = round_up(stride*C, 128)  (lane-dense, zero-padded).
    """
    C_in, C_out, k = w.shape
    s = stride
    assert C_in == C_out and k == 2 * s, "TConvBlock kernel assumes kernel_size == 2*stride"
    C = C_out
    sC = s * C
    Np = ((sC + 127) // 128) * 128                    # lane-dense output width

    # w_cat[c, r*C+o] = W[c,o,r] ; w_cat[C+c, r*C+o] = W[c,o,r+s]
    wlo = jnp.transpose(w[:, :, :s], (0, 2, 1)).reshape(C, sC)
    whi = jnp.transpose(w[:, :, s:], (0, 2, 1)).reshape(C, sC)
    w_cat = jnp.concatenate([wlo, whi], axis=0)       # (2C, sC)
    w_cat = jnp.pad(w_cat, ((0, 0), (0, Np - sC)))    # zero pad lanes -> (2C, Np)

    scale_row = jnp.pad(jnp.tile(bn_scale, (s,)), (0, Np - sC)).reshape(1, Np)
    shift_row = jnp.pad(jnp.tile(bn_shift, (s,)), (0, Np - sC)).reshape(1, Np)
    return w_cat, scale_row, shift_row


# --------------------------------- forward ---------------------------------- #

def tconv_block(x_ncl, w_cat, scale_row, shift_row, stride):
    """PyTorch-equivalent TConvBlock forward (BatchNorm in eval mode).

    x_ncl : (B, C, L) float32 (PyTorch NCL layout)
    w_cat/scale_row/shift_row : from fold_tconv_params (precomputed once)
    returns : (B, C, L_out) with L_out = L*stride - stride + 2
    """
    B, C, L = x_ncl.shape
    s = stride
    assert w_cat.shape[0] == 2 * C
    Np = w_cat.shape[1]
    k = 2 * s
    p = s - 1                                          # == (k - 1) // 2
    L_out = (L - 1) * s - 2 * p + k                    # == L*s - s + 2
    Mp = ((L + 1 + 7) // 8) * 8                        # extended rows, padded to 8

    # TODO(synk): boundary relayout; disappears if the surrounding model is NLC.
    x_nlc = jnp.transpose(x_ncl, (0, 2, 1))            # (B, L, C) channels-last

    flops = 2 * (B * Mp) * (2 * C) * Np + 3 * (B * Mp) * Np
    bytes_accessed = 4 * (B * L * C + (2 * C) * Np + 2 * Np + B * Mp * Np)

    y = pl.pallas_call(
        _tconv_bn_relu_kernel,
        out_shape=jax.ShapeDtypeStruct((B * Mp, Np), jnp.float32),
        grid=(1,),                                     # single invocation: B folded into M
        in_specs=[
            pl.BlockSpec((B, L, C), lambda i: (0, 0, 0)),
            pl.BlockSpec((2 * C, Np), lambda i: (0, 0)),
            pl.BlockSpec((1, Np), lambda i: (0, 0)),
            pl.BlockSpec((1, Np), lambda i: (0, 0)),
        ],
        out_specs=pl.BlockSpec((B * Mp, Np), lambda i: (0, 0)),
        scratch_shapes=[pltpu.VMEM((B * Mp, 2 * C), jnp.float32)],
        compiler_params=pltpu.CompilerParams(dimension_semantics=("arbitrary",)),
        cost_estimate=pl.CostEstimate(
            flops=flops, transcendentals=0, bytes_accessed=bytes_accessed),
    )(x_nlc, w_cat, scale_row, shift_row)

    # out_ext[b, t0*s + r, o] == y[b*Mp + t0, r*C + o]:
    # drop row/lane padding, phase-unflatten (free row-major bitcast), slice the
    # p discarded edge phases, and go back to NCL.  XLA fuses this into one copy.
    y = y.reshape(B, Mp, Np)[:, :L + 1, :s * C]        # (B, L+1, s*C)
    out_ext = y.reshape(B, (L + 1) * s, C)             # (B, (L+1)*s, C)
    out = out_ext[:, p:p + L_out, :]                   # (B, L_out, C)
    return jnp.transpose(out, (0, 2, 1))               # (B, C, L_out)


# ----------------------------- pure-JAX reference --------------------------- #

def _reference_tconv_block(x_ncl, w, bn_scale, bn_shift, stride):
    """Direct (slow) ConvTranspose1d + folded BN + ReLU, PyTorch semantics."""
    B, C, L = x_ncl.shape
    k = w.shape[2]
    p = (k - 1) // 2
    L_out = (L - 1) * stride - 2 * p + k
    ext = (L - 1) * stride + k
    out_full = jnp.zeros((B, C, ext), jnp.float32)
    for t in range(L):
        for ki in range(k):
            contrib = jnp.einsum("bc,co->bo", x_ncl[:, :, t], w[:, :, ki])
            out_full = out_full.at[:, :, t * stride + ki].add(contrib)
    out = out_full[:, :, p:p + L_out]
    out = out * bn_scale[None, :, None] + bn_shift[None, :, None]
    return jnp.maximum(out, 0.0)


# ----------------------------------- main ----------------------------------- #

if __name__ == "__main__":
    key = jax.random.PRNGKey(0)
    eps = 1e-5
    B = 2
    # (inner_channels, kernel_size, stride, L):
    #   C=64/s=2 -> Np = 128 lane-dense, K = 2C = 128, M = B*Mp = 48
    #   C=32/s=5 -> s*C = 160 padded to Np = 256, K = 64, M = 32
    configs = [(64, 4, 2, 16), (32, 10, 5, 8)]

    fwd = jax.jit(tconv_block, static_argnums=(4,))

    for (C, k, s, L) in configs:
        key, kx, kw, kg, kb, km, kv = jax.random.split(key, 7)
        x = jax.random.normal(kx, (B, C, L), jnp.float32)
        w = 0.2 * jax.random.normal(kw, (C, C, k), jnp.float32)  # (Cin, Cout, k)
        gamma = 1.0 + 0.1 * jax.random.normal(kg, (C,), jnp.float32)
        beta = 0.1 * jax.random.normal(kb, (C,), jnp.float32)
        run_mean = 0.1 * jax.random.normal(km, (C,), jnp.float32)
        run_var = jnp.abs(1.0 + 0.1 * jax.random.normal(kv, (C,), jnp.float32))
        scale = gamma / jnp.sqrt(run_var + eps)                  # BN folded to affine
        shift = beta - run_mean * scale

        # One-time parameter folding (not part of the per-forward path).
        w_cat, scale_row, shift_row = fold_tconv_params(w, scale, shift, s)

        out = fwd(x, w_cat, scale_row, shift_row, s)
        out = jax.block_until_ready(out)

        ref = _reference_tconv_block(x, w, scale, shift, s)
        L_out = (L - 1) * s - 2 * ((k - 1) // 2) + k
        assert out.shape == (B, C, L_out), out.shape
        assert ref.shape == out.shape, (ref.shape, out.shape)
        assert jnp.all(jnp.isfinite(out))
        max_err = float(jnp.max(jnp.abs(out - ref)))
        assert jnp.allclose(out, ref, atol=2e-4, rtol=2e-4), max_err

    print("KERNEL_OK")
</pallas_src>

<mosaic_0001>
module attributes {stable_mosaic.version = 11 : i64} {
  func.func @_tconv_bn_relu_kernel(%arg0: i32, %arg1: memref<2x16x64xf32, #tpu.memory_space<vmem>>, %arg2: memref<128x128xf32, #tpu.memory_space<vmem>>, %arg3: memref<1x128xf32, #tpu.memory_space<vmem>>, %arg4: memref<1x128xf32, #tpu.memory_space<vmem>>, %arg5: memref<48x128xf32, #tpu.memory_space<vmem>>, %arg6: memref<48x128xf32, #tpu.memory_space<vmem>>) attributes {dimension_semantics = [#tpu.dimension_semantics<arbitrary>], iteration_bounds = array<i64: 1>, scalar_prefetch = 0 : i64, scratch_operands = 1 : i64, tpu.core_type = #tpu.core_type<tc>, window_params = [{pipeline_mode = #tpu.pipeline_mode<synchronous>, transform_indices = @transform_0, window_bounds = array<i64: 2, 16, 64>}, {pipeline_mode = #tpu.pipeline_mode<synchronous>, transform_indices = @transform_1, window_bounds = array<i64: 128, 128>}, {pipeline_mode = #tpu.pipeline_mode<synchronous>, transform_indices = @transform_2, window_bounds = array<i64: 1, 128>}, {pipeline_mode = #tpu.pipeline_mode<synchronous>, transform_indices = @transform_3, window_bounds = array<i64: 1, 128>}, {pipeline_mode = #tpu.pipeline_mode<synchronous>, transform_indices = @transform_4, window_bounds = array<i64: 48, 128>}]} {
    %cst = arith.constant 0.000000e+00 : f32
    %0 = vector.broadcast %cst : f32 to vector<48x128xf32>
    %c0 = arith.constant 0 : index
    %c0_0 = arith.constant 0 : index
    %1 = vector.load %arg6[%c0, %c0_0] : memref<48x128xf32, #tpu.memory_space<vmem>>, vector<48x128xf32>
    tpu.vector_store %arg6[%c0, %c0_0], %0 {strides = array<i32>} : memref<48x128xf32, #tpu.memory_space<vmem>>, vector<48x128xf32>,
    %c0_1 = arith.constant 0 : index
    %c0_2 = arith.constant 0 : index
    %c0_3 = arith.constant 0 : index
    %2 = vector.load %arg1[%c0_1, %c0_2, %c0_3] : memref<2x16x64xf32, #tpu.memory_space<vmem>>, vector<1x16x64xf32>
    %3 = vector.shape_cast %2 : vector<1x16x64xf32> to vector<16x64xf32>
    %c0_4 = arith.constant 0 : index
    %c0_5 = arith.constant 0 : index
    %4 = vector.load %arg6[%c0_4, %c0_5] : memref<48x128xf32, #tpu.memory_space<vmem>>, vector<16x64xf32>
    tpu.vector_store %arg6[%c0_4, %c0_5], %3 {strides = array<i32>} : memref<48x128xf32, #tpu.memory_space<vmem>>, vector<16x64xf32>,
    %c1 = arith.constant 1 : index
    %c64 = arith.constant 64 : index
    %5 = vector.load %arg6[%c1, %c64] : memref<48x128xf32, #tpu.memory_space<vmem>>, vector<16x64xf32>
    tpu.vector_store %arg6[%c1, %c64], %3 {strides = array<i32>} : memref<48x128xf32, #tpu.memory_space<vmem>>, vector<16x64xf32>,
    %c1_6 = arith.constant 1 : index
    %c0_7 = arith.constant 0 : index
    %c0_8 = arith.constant 0 : index
    %6 = vector.load %arg1[%c1_6, %c0_7, %c0_8] : memref<2x16x64xf32, #tpu.memory_space<vmem>>, vector<1x16x64xf32>
    %7 = vector.shape_cast %6 : vector<1x16x64xf32> to vector<16x64xf32>
    %c24 = arith.constant 24 : index
    %c0_9 = arith.constant 0 : index
    %8 = vector.load %arg6[%c24, %c0_9] : memref<48x128xf32, #tpu.memory_space<vmem>>, vector<16x64xf32>
    tpu.vector_store %arg6[%c24, %c0_9], %7 {strides = array<i32>} : memref<48x128xf32, #tpu.memory_space<vmem>>, vector<16x64xf32>,
    %c25 = arith.constant 25 : index
    %c64_10 = arith.constant 64 : index
    %9 = vector.load %arg6[%c25, %c64_10] : memref<48x128xf32, #tpu.memory_space<vmem>>, vector<16x64xf32>
    tpu.vector_store %arg6[%c25, %c64_10], %7 {strides = array<i32>} : memref<48x128xf32, #tpu.memory_space<vmem>>, vector<16x64xf32>,
    %c0_11 = arith.constant 0 : index
    %c0_12 = arith.constant 0 : index
    %10 = vector.load %arg6[%c0_11, %c0_12] : memref<48x128xf32, #tpu.memory_space<vmem>>, vector<48x128xf32>
    %c0_13 = arith.constant 0 : index
    %c0_14 = arith.constant 0 : index
    %11 = vector.load %arg2[%c0_13, %c0_14] : memref<128x128xf32, #tpu.memory_space<vmem>>, vector<128x128xf32>
    %cst_15 = arith.constant dense<0.000000e+00> : vector<48x128xf32>
    %12 = tpu.matmul %10, %11, %cst_15 {dimension_numbers = #tpu.dot_dimension_numbers<[1], [0], [0], [1], [0, 0, 1, 1], [], []>} : vector<48x128xf32>, vector<128x128xf32>, vector<48x128xf32> -> vector<48x128xf32>
    %c0_16 = arith.constant 0 : index
    %c0_17 = arith.constant 0 : index
    %13 = vector.load %arg3[%c0_16, %c0_17] : memref<1x128xf32, #tpu.memory_space<vmem>>, vector<1x128xf32>
    %14 = vector.broadcast %13 : vector<1x128xf32> to vector<48x128xf32>
    %15 = arith.mulf %12, %14 : vector<48x128xf32>
    %c0_18 = arith.constant 0 : index
    %c0_19 = arith.constant 0 : index
    %16 = vector.load %arg4[%c0_18, %c0_19] : memref<1x128xf32, #tpu.memory_space<vmem>>, vector<1x128xf32>
    %17 = vector.broadcast %16 : vector<1x128xf32> to vector<48x128xf32>
    %18 = arith.addf %15, %17 : vector<48x128xf32>
    %cst_20 = arith.constant 0.000000e+00 : f32
    %19 = vector.broadcast %cst_20 : f32 to vector<48x128xf32>
    %20 = arith.maximumf %18, %19 : vector<48x128xf32>
    %c0_21 = arith.constant 0 : index
    %c0_22 = arith.constant 0 : index
    %21 = vector.load %arg5[%c0_21, %c0_22] : memref<48x128xf32, #tpu.memory_space<vmem>>, vector<48x128xf32>
    tpu.vector_store %arg5[%c0_21, %c0_22], %20 {strides = array<i32>} : memref<48x128xf32, #tpu.memory_space<vmem>>, vector<48x128xf32>,
    return
  }
  func.func @transform_0(%arg0: i32) -> (i32, i32, i32) {
    %c0_i32 = arith.constant 0 : i32
    %c0_i32_0 = arith.constant 0 : i32
    %c0_i32_1 = arith.constant 0 : i32
    %c0_i32_2 = arith.constant 0 : i32
    return %c0_i32, %c0_i32_0, %c0_i32_1 : i32, i32, i32
  }
  func.func @transform_1(%arg0: i32) -> (i32, i32) {
    %c0_i32 = arith.constant 0 : i32
    %c0_i32_0 = arith.constant 0 : i32
    %c0_i32_1 = arith.constant 0 : i32
    return %c0_i32, %c0_i32_0 : i32, i32
  }
  func.func @transform_2(%arg0: i32) -> (i32, i32) {
    %c0_i32 = arith.constant 0 : i32
    %c0_i32_0 = arith.constant 0 : i32
    %c0_i32_1 = arith.constant 0 : i32
    return %c0_i32, %c0_i32_0 : i32, i32
  }
  func.func @transform_3(%arg0: i32) -> (i32, i32) {
    %c0_i32 = arith.constant 0 : i32
    %c0_i32_0 = arith.constant 0 : i32
    %c0_i32_1 = arith.constant 0 : i32
    return %c0_i32, %c0_i32_0 : i32, i32
  }
  func.func @transform_4(%arg0: i32) -> (i32, i32) {
    %c0_i32 = arith.constant 0 : i32
    %c0_i32_0 = arith.constant 0 : i32
    %c0_i32_1 = arith.constant 0 : i32
    return %c0_i32, %c0_i32_0 : i32, i32
  }
}

</mosaic_0001>

<bundles_post_ra>
// kernel: tconv_block.1
= control target key start
LH: loop header
LB: loop body
LE: loop exit
PB: predicated region body
PF: predicated region fallthrough
CT: control target
= control target key end

     0   :  { %9 = vsyncpa [#allocation4], 0  ;;  %s489_s0 = inlined_call_operand.hbm [shape: f32[2,16,64], index: 0, kind: input, shape index: {}]   ;;  %s490_s1 = inlined_call_operand.hbm [shape: f32[128,128], index: 1, kind: input, shape index: {}]   ;;  %s491_s2 = inlined_call_operand.vmem [shape: f32[1,128], index: 2, kind: input, shape index: {}]   ;;  %s492_s3 = inlined_call_operand.vmem [shape: f32[1,128], index: 3, kind: input, shape index: {}]   ;;  %s493_s4 = inlined_call_operand.vmem [shape: f32[48,128], index: 4, kind: output, shape index: {}]  }
   0x1   :  { %10 = vsyncpa [#allocation6], 0  ;;  %s410_s15 = smov [#allocation3]   ;;  %s362_s19 = scalar_lea.hbm %s489_s0, 512 }
   0x2   :  { %s16_s16 = sshll.u32 %s410_s15, 4  ;;  %p363_p0 = scmp.ne.s32.totalorder %s489_s0, %s362_s19  ;;  %s17_s16 = int_to_ptr.vmem [resolvable:$true] %s16_s16 }
   0x3   :  { %p366_p1 = scmp.lt.u32.totalorder %s362_s19, %s489_s0 }
   0x5   :  { %p368_p2 = pnand %p366_p1, %p363_p0 }
   0x7   :  { %371 = shalt.err (!%p368_p2)
}
   0x8   :  { %s372_s24 = scalar_lea.vmem %s17_s16, 512  ;;  %p377_p4 = scmp.lt.s32.totalorder %s17_s16, %s17_s16 }
   0x9   :  { %p373_p3 = scmp.ne.s32.totalorder %s17_s16, %s372_s24  ;;  %p378_p5 = scmp.lt.s32.totalorder %s372_s24, %s372_s24 }
   0xb   :  { %p379_p6 = por %p378_p5, %p377_p4 }
   0xd   :  { %p380_p7 = pnand %p379_p6, %p373_p3 }
   0xf   :  { %383 = shalt.err (!%p380_p7)
}
  0x10   :  { %s411_s25 = smov 128   ;;  %s412_s26 = smov 8  }
  0x11   :  { %22 = dma.hbm_to_vmem [thread:$0]  %s489_s0, 512, %s17_s16, [#allocation4], %s411_s25, %s411_s25, %s412_s26  }
  0x12   :  { %s413_s29 = smov [#allocation5]   ;;  %s384_s7 = scalar_lea.hbm %s490_s1, 2048 }
  0x13   :  { %s28_s30 = sshll.u32 %s413_s29, 4  ;;  %p385_p8 = scmp.ne.s32.totalorder %s490_s1, %s384_s7  ;;  %s29_s30 = int_to_ptr.vmem [resolvable:$true] %s28_s30 }
  0x14   :  { %p388_p9 = scmp.lt.u32.totalorder %s384_s7, %s490_s1 }
  0x16   :  { %p390_p10 = pnand %p388_p9, %p385_p8 }
  0x18   :  { %393 = shalt.err (!%p390_p10)
}
  0x19   :  { %s394_s12 = scalar_lea.vmem %s29_s30, 2048  ;;  %p399_p12 = scmp.lt.s32.totalorder %s29_s30, %s29_s30 }
  0x1a   :  { %p395_p11 = scmp.ne.s32.totalorder %s29_s30, %s394_s12  ;;  %p400_p13 = scmp.lt.s32.totalorder %s394_s12, %s394_s12 }
  0x1c   :  { %p401_p0 = por %p400_p13, %p399_p12 }
  0x1e   :  { %p402_p1 = pnand %p401_p0, %p395_p11 }
  0x20   :  { %405 = shalt.err (!%p402_p1)
}
  0x21   :  { %34 = dma.hbm_to_vmem [thread:$0]  %s490_s1, 2048, %s29_s30, [#allocation6], %s411_s25, %s411_s25, %s412_s26  }
  0x22   :  { %406 = dma.done.wait [#allocation4], 512  }
  0x23   :  { %407 = vsyncadd [#allocation4], 4294966784 }
  0x24   :  { %408 = dma.done.wait [#allocation6], 2048  }
  0x25   :  { %409 = vsyncadd [#allocation6], 4294965248  ;;  %v414_v0 = vmov 0.0   ;;  %vm53_vm0 = vcmask 523264   ;;  %v52_v1 = vld [vmem:[#allocation3 + $0x8] sm:$0xff]  ;;  %v51_v2 = vld [vmem:[#allocation3] sm:$0xff] }
  0x26   :  { %46 = vst [vmem:[#allocation2 + $0x8] sm:$0xff] %v414_v0  ;;  %45 = vst [vmem:[#allocation2] sm:$0xff] %v414_v0  ;;  %v68_v3 = vld [vmem:[#allocation3 + $0x10] sm:$0xff]  ;;  %s415_s14 = smov 64   ;;  %v69_v4 = vld [vmem:[#allocation3 + $0x18] sm:$0xff]  ;;  %vm64_vm1 = vcmask 1048064  }
  0x27   :  { %47 = vst [vmem:[#allocation2 + $0x10] sm:$0xff] %v414_v0  ;;  %48 = vst [vmem:[#allocation2 + $0x18] sm:$0xff] %v414_v0  ;;  %60 = vrot.lane.b32.xlu0 %v52_v1, %s415_s14  ;;  %58 = vrot.lane.b32.xlu1 %v51_v2, %s415_s14  ;;  %v88_v5 = vld [vmem:[#allocation5] sm:$0xff]  ;;  %v89_v6 = vld [vmem:[#allocation5 + $0x8] sm:$0xff] }
  0x28   :  { %49 = vst [vmem:[#allocation2 + $0x20] sm:$0xff] %v414_v0  ;;  %50 = vst [vmem:[#allocation2 + $0x28] sm:$0xff] %v414_v0  ;;  %v308_v7 = vpack.c.bf16 %v89_v6, %v88_v5  ;;  %v90_v8 = vld [vmem:[#allocation5 + $0x10] sm:$0xff]  ;;  %v91_v9 = vld [vmem:[#allocation5 + $0x18] sm:$0xff] }
  0x29   :  { %55 = vst.msk [vmem:[#allocation2 + $0x8] sm:$0xff] %vm53_vm0, %v52_v1  ;;  %54 = vst.msk [vmem:[#allocation2] sm:$0xff] %vm53_vm0, %v51_v2  ;;  %v312_v10 = vpack.c.bf16 %v91_v9, %v90_v8  ;;  %v92_v11 = vld [vmem:[#allocation5 + $0x20] sm:$0xff]  ;;  %v93_v12 = vld [vmem:[#allocation5 + $0x28] sm:$0xff] }
  0x2a   :  { %70 = vst.msk [vmem:[#allocation2 + $0x18] sm:$0xff] %vm53_vm0, %v68_v3  ;;  %71 = vst.msk [vmem:[#allocation2 + $0x20] sm:$0xff] %vm53_vm0, %v69_v4  ;;  %309 = vmatprep.subr.bf16.mxu0 %v308_v7  ;;  %340 = vmatprep.subr.bf16.mxu1 %v308_v7  ;;  %v316_v13 = vpack.c.bf16 %v93_v12, %v92_v11  ;;  %v94_v14 = vld [vmem:[#allocation5 + $0x30] sm:$0xff]  ;;  %v95_v15 = vld [vmem:[#allocation5 + $0x38] sm:$0xff] }
  0x2b   :  { %74 = vrot.lane.b32.xlu0 %v68_v3, %s415_s14  ;;  %76 = vrot.lane.b32.xlu1 %v69_v4, %s415_s14  ;;  %v320_v16 = vpack.c.bf16 %v95_v15, %v94_v14  ;;  %v96_v17 = vld [vmem:[#allocation5 + $0x40] sm:$0xff]  ;;  %v97_v18 = vld [vmem:[#allocation5 + $0x48] sm:$0xff]  ;;  %v98_v20 = vld [vmem:[#allocation5 + $0x50] sm:$0xff] }
  0x2c   :  { %311 = vmatpush3.bf16.msra.mxu0 %v308_v7  ;;  %348 = vmatpush3.bf16.msra.mxu1 %v308_v7  ;;  %v324_v19 = vpack.c.bf16 %v97_v18, %v96_v17  ;;  %v99_v21 = vld [vmem:[#allocation5 + $0x58] sm:$0xff]  ;;  %v100_v23 = vld [vmem:[#allocation5 + $0x60] sm:$0xff]  ;;  %v101_v24 = vld [vmem:[#allocation5 + $0x68] sm:$0xff] }
  0x2d   :  { %313 = vmatprep.subr.bf16.mxu0 %v312_v10  ;;  %341 = vmatprep.subr.bf16.mxu1 %v312_v10  ;;  %v328_v22 = vpack.c.bf16 %v99_v21, %v98_v20  ;;  %v332_v25 = vpack.c.bf16 %v101_v24, %v100_v23  ;;  %v102_v26 = vld [vmem:[#allocation5 + $0x70] sm:$0xff]  ;;  %v103_v27 = vld [vmem:[#allocation5 + $0x78] sm:$0xff] }
  0x2e   :  { %v336_v28 = vpack.c.bf16 %v103_v27, %v102_v26  ;;  %v243_v39 = vld [vmem:[%s491_s2] ss:$0 sm:$0xff] }
  0x2f   :  { %v244_v41 = vld [vmem:[%s492_s3] ss:$0 sm:$0xff] }
  0x30   :  { %315 = vmatpush3.bf16.msra.mxu0 %v312_v10  ;;  %349 = vmatpush3.bf16.msra.mxu1 %v312_v10 }
  0x31   :  { %317 = vmatprep.subr.bf16.mxu0 %v316_v13  ;;  %342 = vmatprep.subr.bf16.mxu1 %v316_v13 }
  0x34   :  { %319 = vmatpush3.bf16.msra.mxu0 %v316_v13  ;;  %350 = vmatpush3.bf16.msra.mxu1 %v316_v13 }
  0x35   :  { %321 = vmatprep.subr.bf16.mxu0 %v320_v16  ;;  %343 = vmatprep.subr.bf16.mxu1 %v320_v16 }
  0x38   :  { %323 = vmatpush3.bf16.msra.mxu0 %v320_v16  ;;  %351 = vmatpush3.bf16.msra.mxu1 %v320_v16 }
  0x39   :  { %325 = vmatprep.subr.bf16.mxu0 %v324_v19  ;;  %344 = vmatprep.subr.bf16.mxu1 %v324_v19 }
  0x3c   :  { %327 = vmatpush3.bf16.msra.mxu0 %v324_v19  ;;  %352 = vmatpush3.bf16.msra.mxu1 %v324_v19 }
  0x3d   :  { %329 = vmatprep.subr.bf16.mxu0 %v328_v22  ;;  %345 = vmatprep.subr.bf16.mxu1 %v328_v22 }
  0x40   :  { %331 = vmatpush3.bf16.msra.mxu0 %v328_v22  ;;  %353 = vmatpush3.bf16.msra.mxu1 %v328_v22 }
  0x41   :  { %333 = vmatprep.subr.bf16.mxu0 %v332_v25  ;;  %346 = vmatprep.subr.bf16.mxu1 %v332_v25 }
  0x44   :  { %335 = vmatpush3.bf16.msra.mxu0 %v332_v25  ;;  %354 = vmatpush3.bf16.msra.mxu1 %v332_v25 }
  0x45   :  { %337 = vmatprep.subr.bf16.mxu0 %v336_v28  ;;  %347 = vmatprep.subr.bf16.mxu1 %v336_v28 }
  0x48   :  { %339 = vmatpush3.bf16.msra.mxu0 %v336_v28  ;;  %355 = vmatpush3.bf16.msra.mxu1 %v336_v28 }
  0x99   :  { %v61_v29 = vpop.permute.xlu0 %60  ;;  %v59_v30 = vpop.permute.xlu1 %58 }
  0x9a   :  { %66 = vst.msk [vmem:[#allocation2 + $0x9] sm:$0xff] %vm64_vm1, %v61_v29  ;;  %65 = vst.msk [vmem:[#allocation2 + $0x1] sm:$0xff] %vm64_vm1, %v59_v30 }
  0x9d   :  { %v75_v31 = vpop.permute.xlu0 %74  ;;  %v77_v32 = vpop.permute.xlu1 %76 }
  0x9e   :  { %80 = vst.msk [vmem:[#allocation2 + $0x19] sm:$0xff] %vm64_vm1, %v75_v31  ;;  %81 = vst.msk [vmem:[#allocation2 + $0x21] sm:$0xff] %vm64_vm1, %v77_v32 }
  0xa1   :  { %v82_v33 = vld [vmem:[#allocation2] sm:$0xff]  ;;  %v84_v34 = vld [vmem:[#allocation2 + $0x10] sm:$0xff]  ;;  %v83_v35 = vld [vmem:[#allocation2 + $0x8] sm:$0xff] }
  0xa2   :  { %299 = vmatprep.mubr.f32.mxu0 %v82_v33  ;;  %302 = vmatprep.mubr.f32.mxu1 %v84_v34 }
  0xa3   :  { %300 = vmatmul.mubr.f32.vlgmr.msra.gmra.mrb[0].mxu0 %v83_v35 }
  0xa5   :  { %v85_v36 = vld [vmem:[#allocation2 + $0x18] sm:$0xff]  ;;  %v86_v37 = vld [vmem:[#allocation2 + $0x20] sm:$0xff]  ;;  %v87_v38 = vld [vmem:[#allocation2 + $0x28] sm:$0xff] }
  0xa6   :  { %303 = vmatmul.mubr.f32.vlgmr.msra.gmra.mrb[0].mxu1 %v85_v36 }
  0xa7   :  { %305 = vmatprep.mubr.f32.mxu1 %v86_v37 }
  0xaa   :  { %306 = vmatmul.mubr.f32.gmra.mrb[2].mxu1 %v87_v38 }
 0x176   :  { %v301_v40 = vpop.f32.mrb[0].mxu0 }
 0x177   :  { %v207_v42 = vmul.f32 %v301_v40, %v243_v39  ;;  %v170_v43 = vpop.f32.mrb[1].mxu0 }
 0x178   :  { %v206_v44 = vmul.f32 %v243_v39, %v170_v43 }
 0x179   :  { %v220_v45 = vadd.f32 %v244_v41, %v207_v42  ;;  %v304_v46 = vpop.f32.mrb[0].mxu1 }
 0x17a   :  { %v219_v47 = vadd.f32 %v244_v41, %v206_v44  ;;  %v209_v48 = vmul.f32 %v304_v46, %v243_v39  ;;  %v180_v49 = vpop.f32.mrb[1].mxu1 }
 0x17b   :  { %v226_v50 = vmax.f32 %v220_v45, 0.0  ;;  %v208_v51 = vmul.f32 %v243_v39, %v180_v49 }
 0x17c   :  { %v225_v52 = vmax.f32 %v219_v47, 0.0  ;;  %v222_v53 = vadd.f32 %v244_v41, %v209_v48 }
 0x17d   :  { %232 = vst [vmem:[%s493_s4 + $0x8] sm:$0xff] %v226_v50  ;;  %v221_v54 = vadd.f32 %v244_v41, %v208_v51  ;;  %v307_v55 = vpop.f32.mrb[2].mxu1 }
 0x17e   :  { %231 = vst [vmem:[%s493_s4] sm:$0xff] %v225_v52  ;;  %v228_v56 = vmax.f32 %v222_v53, 0.0  ;;  %v211_v57 = vmul.f32 %v307_v55, %v243_v39  ;;  %v190_v58 = vpop.f32.mrb[3].mxu1 }
 0x17f   :  { %v227_v59 = vmax.f32 %v221_v54, 0.0  ;;  %v210_v60 = vmul.f32 %v243_v39, %v190_v58 }
 0x180   :  { %234 = vst [vmem:[%s493_s4 + $0x18] sm:$0xff] %v228_v56  ;;  %v224_v61 = vadd.f32 %v244_v41, %v211_v57 }
 0x181   :  { %233 = vst [vmem:[%s493_s4 + $0x10] sm:$0xff] %v227_v59  ;;  %v223_v62 = vadd.f32 %v244_v41, %v210_v60 }
 0x182   :  { %v230_v63 = vmax.f32 %v224_v61, 0.0 }
 0x183   :  { %v229_v0 = vmax.f32 %v223_v62, 0.0 }
 0x184   :  { %236 = vst [vmem:[%s493_s4 + $0x28] sm:$0xff] %v230_v63 }
 0x185   :  { %235 = vst [vmem:[%s493_s4 + $0x20] sm:$0xff] %v229_v0 }
 0x186   :  { %241 = vsyncpa [#allocation4], 1 }
 0x187   :  { %242 = vsyncpa [#allocation6], 1 }

</bundles_post_ra>
